<compile_context>
chip_gen: v6e
topology: v6e:2x2x1
jax: 0.10.0
libtpu: 0.0.40
codegen_flags: <defaults>
</compile_context>

<pallas_src>
import functools

import jax
import jax.numpy as jnp
from jax.experimental import pallas as pl
from jax.experimental.pallas import tpu as pltpu


def _vmem_capacity_bytes():
    """Physical VMEM of the current generation; conservative 64 MiB (v7x-sized)
    fallback when the query is unavailable (e.g. CPU interpret mode)."""
    try:
        cap = int(pltpu.get_tpu_info().vmem_capacity_bytes)
        if cap > 0:
            return cap
    except Exception:
        pass
    return 64 << 20


_VMEM_CAP_BYTES = _vmem_capacity_bytes()
# Double-buffered operand footprint cap and scoped-VMEM limit, per generation:
#   v7x  (64 MiB):  ~25.6 MiB budget / ~38.4 MiB limit  (under the ~48 MiB cliff)
#   v5e/v6e (128 MiB): ~51.2 MiB budget / ~76.8 MiB limit
_VMEM_BUDGET_BYTES = max(int(0.40 * _VMEM_CAP_BYTES), 8 << 20)
_VMEM_LIMIT_BYTES = max(int(0.60 * _VMEM_CAP_BYTES), 16 << 20)


def _choose_block_rows(n_rows, width, n_streams, dtype):
    """Biggest row-tile whose double-buffered footprint (2 buffers per streamed
    operand) fits the budget; rounded to sublane granularity, clamped to >= 1 sublane,
    never a full-extent fallback that could blow VMEM."""
    itemsize = jnp.dtype(dtype).itemsize
    sublane = max(8, 32 // itemsize)            # 8 rows f32, 16 bf16, 32 int8
    bytes_per_row = max(width * itemsize, 1)
    rows_budget = max(_VMEM_BUDGET_BYTES // (2 * n_streams * bytes_per_row), 1)
    rows = min(rows_budget, n_rows)
    if rows >= n_rows:
        return int(n_rows)                      # full extent is always legal
    rows = max((rows // sublane) * sublane, min(sublane, n_rows))
    return int(max(rows, 1))


def _lane_dense_shape(n, d, max_width=4096):
    """Reshape geometry for elementwise kernels: widest last dim (multiple of 128,
    <= max_width) that divides n*d.  Falls back to (n, d) if none exists."""
    total = n * d
    if total % 128 != 0:
        return n, d
    for cand in (4096, 2048, 1024, 512, 256, 128):
        if cand <= max_width and total % cand == 0:
            return total // cand, cand
    return n, d


# ---------------------------------------------------------------------------
# LayerNorm kernel (matches the PyTorch module: unbiased std, (std + eps) denom)
# ---------------------------------------------------------------------------
def _layernorm_kernel(x_ref, a_ref, b_ref, o_ref, *, eps):
    x = x_ref[...].astype(jnp.float32)
    d = x.shape[-1]
    mean = jnp.mean(x, axis=-1, keepdims=True)
    xc = x - mean
    # torch.Tensor.std(-1) is *unbiased* (divides by N-1); module divides by (std+eps).
    var = jnp.sum(xc * xc, axis=-1, keepdims=True) / (d - 1)
    inv = 1.0 / (jnp.sqrt(var) + eps)           # exact; one divide per row, negligible
    y = xc * (a_ref[...].astype(jnp.float32) * inv) + b_ref[...].astype(jnp.float32)
    o_ref[...] = y.astype(o_ref.dtype)


def layer_norm_pallas(x2d, a2, b2, eps):
    n, d = x2d.shape
    a2 = a2.reshape(1, d)
    b2 = b2.reshape(1, d)
    block_rows = _choose_block_rows(n, d, n_streams=2, dtype=x2d.dtype)  # x + out stream
    return pl.pallas_call(
        functools.partial(_layernorm_kernel, eps=eps),
        out_shape=jax.ShapeDtypeStruct((n, d), x2d.dtype),
        grid_spec=pltpu.PrefetchScalarGridSpec(
            num_scalar_prefetch=0,
            grid=(pl.cdiv(n, block_rows),),
            in_specs=[
                pl.BlockSpec((block_rows, d), lambda i: (i, 0)),
                pl.BlockSpec((1, d), lambda i: (0, 0)),
                pl.BlockSpec((1, d), lambda i: (0, 0)),
            ],
            out_specs=pl.BlockSpec((block_rows, d), lambda i: (i, 0)),
        ),
        # NOTE(v7x): if xprof shows a single busy TensorCore, switch to CORE_PARALLEL.
        compiler_params=pltpu.CompilerParams(
            dimension_semantics=("parallel",),
            vmem_limit_bytes=_VMEM_LIMIT_BYTES,
        ),
    )(x2d, a2, b2)


# ---------------------------------------------------------------------------
# Residual add (+ optional training-mode dropout via precomputed keep mask)
# ---------------------------------------------------------------------------
def _residual_eval_kernel(x_ref, y_ref, o_ref):
    # eval-mode nn.Dropout is identity: out = x + y
    o_ref[...] = x_ref[...] + y_ref[...]


def _residual_dropout_kernel(x_ref, y_ref, m_ref, o_ref, *, scale):
    # f32 math so the 1/(1-p) scale is applied at full precision even for bf16 inputs;
    # extra VPU work is hidden under the HBM-bound pipeline.
    x = x_ref[...].astype(jnp.float32)
    y = y_ref[...].astype(jnp.float32)
    m = m_ref[...].astype(jnp.float32)
    o_ref[...] = (x + y * m * scale).astype(o_ref.dtype)


def residual_dropout_pallas(x2d, y2d, p, training, dropout_key=None):
    n, d = x2d.shape
    use_dropout = bool(training) and float(p) > 0.0

    # Lane-dense slab: wide last dim (multiple of 128) -> unmasked vst for any D,
    # long contiguous DMAs, block geometry decoupled from the feature width.
    rows, width = _lane_dense_shape(n, d)
    xs = x2d.reshape(rows, width)
    ys = y2d.reshape(rows, width)

    params = pltpu.CompilerParams(
        dimension_semantics=("parallel",),
        vmem_limit_bytes=_VMEM_LIMIT_BYTES,
    )

    if use_dropout:
        if dropout_key is None:
            dropout_key = jax.random.PRNGKey(0)
        # Keep-mask is generated from the key on the (n, d) layout, so it is
        # independent of the slab/tiling choice and reproducible by the caller.
        keep = jax.random.bernoulli(dropout_key, 1.0 - float(p), (n, d)).astype(x2d.dtype)
        ms = keep.reshape(rows, width)
        scale = 1.0 / (1.0 - float(p))
        block_rows = _choose_block_rows(rows, width, n_streams=4, dtype=x2d.dtype)
        out = pl.pallas_call(
            functools.partial(_residual_dropout_kernel, scale=scale),
            out_shape=jax.ShapeDtypeStruct((rows, width), x2d.dtype),
            grid_spec=pltpu.PrefetchScalarGridSpec(
                num_scalar_prefetch=0,
                grid=(pl.cdiv(rows, block_rows),),
                in_specs=[
                    pl.BlockSpec((block_rows, width), lambda i: (i, 0)),
                    pl.BlockSpec((block_rows, width), lambda i: (i, 0)),
                    pl.BlockSpec((block_rows, width), lambda i: (i, 0)),
                ],
                out_specs=pl.BlockSpec((block_rows, width), lambda i: (i, 0)),
            ),
            compiler_params=params,
        )(xs, ys, ms)
        return out.reshape(n, d)

    block_rows = _choose_block_rows(rows, width, n_streams=3, dtype=x2d.dtype)
    out = pl.pallas_call(
        _residual_eval_kernel,
        out_shape=jax.ShapeDtypeStruct((rows, width), x2d.dtype),
        grid_spec=pltpu.PrefetchScalarGridSpec(
            num_scalar_prefetch=0,
            grid=(pl.cdiv(rows, block_rows),),
            in_specs=[
                pl.BlockSpec((block_rows, width), lambda i: (i, 0)),
                pl.BlockSpec((block_rows, width), lambda i: (i, 0)),
            ],
            out_specs=pl.BlockSpec((block_rows, width), lambda i: (i, 0)),
        ),
        compiler_params=params,
    )(xs, ys)
    return out.reshape(n, d)


# ---------------------------------------------------------------------------
# SublayerConnection.forward equivalent
# ---------------------------------------------------------------------------
def sublayer_connection(x, sublayer, a2, b2, *, eps=1e-7, dropout_p=0.1,
                        training=False, dropout_key=None):
    """out = (x + dropout(sublayer(layernorm(x))[0]), sublayer(layernorm(x))[1])"""
    B, S, D = x.shape
    x2d = x.reshape(B * S, D)
    normed = layer_norm_pallas(x2d, a2, b2, eps).reshape(B, S, D)
    # TODO(synk): when the sublayer is a known matmul/attention, fuse LayerNorm as its
    # prologue and dropout+residual as its epilogue in one pallas_call to cut the
    # ~2.5-3x extra HBM traffic of this three-stage structure; here `sublayer` is an
    # arbitrary user callable, so the stages stay separate.
    returned_value = sublayer(normed)
    y2d = returned_value[0].reshape(B * S, D)
    out2d = residual_dropout_pallas(x2d, y2d, dropout_p, training, dropout_key)
    return out2d.reshape(B, S, D), returned_value[1]


if __name__ == "__main__":
    B, S, D = 2, 8, 128
    key = jax.random.PRNGKey(0)
    kx, kw, kd = jax.random.split(key, 3)
    x = jax.random.normal(kx, (B, S, D), dtype=jnp.float32)

    # LayerNorm params exactly as the module's __init__: ones / zeros.
    a2 = jnp.ones((D,), dtype=jnp.float32)
    b2 = jnp.zeros((D,), dtype=jnp.float32)

    # Example sublayer returning a (output, aux) tuple, as the module expects.
    W = jax.random.normal(kw, (D, D), dtype=jnp.float32) * 0.02

    def sublayer(h):
        y = jnp.einsum("bsd,de->bse", h, W)
        aux = jnp.mean(h, axis=-1)  # stand-in for e.g. attention weights
        return (y, aux)

    eps = 1e-7

    # --- eval-mode path (dropout == identity) ---
    out, aux = sublayer_connection(x, sublayer, a2, b2, eps=eps,
                                   dropout_p=0.1, training=False)
    jax.block_until_ready((out, aux))

    # Pure-JAX reference check (unbiased std, (std + eps) denominator).
    mean = jnp.mean(x, axis=-1, keepdims=True)
    std = jnp.sqrt(jnp.sum((x - mean) ** 2, axis=-1, keepdims=True) / (D - 1))
    normed_ref = a2 * (x - mean) / (std + eps) + b2
    y_ref, aux_ref = sublayer(normed_ref)
    out_ref = x + y_ref
    assert jnp.allclose(out, out_ref, atol=1e-3, rtol=1e-3)
    assert jnp.allclose(aux, aux_ref, atol=1e-3, rtol=1e-3)

    # --- training-mode path (dropout active; mask is reproducible from the key) ---
    p = 0.1
    out_tr, _ = sublayer_connection(x, sublayer, a2, b2, eps=eps,
                                    dropout_p=p, training=True, dropout_key=kd)
    jax.block_until_ready(out_tr)

    normed_p = layer_norm_pallas(x.reshape(B * S, D), a2, b2, eps).reshape(B, S, D)
    y_p, _ = sublayer(normed_p)
    keep = jax.random.bernoulli(kd, 1.0 - p, (B * S, D)).astype(x.dtype).reshape(B, S, D)
    out_tr_ref = x + y_p * keep * (1.0 / (1.0 - p))
    assert jnp.allclose(out_tr, out_tr_ref, atol=1e-4, rtol=1e-4)
    n_drop = int(jnp.sum(keep == 0))
    assert 0 < n_drop < keep.size  # some dropped, some kept

    print("KERNEL_OK")
</pallas_src>

<mosaic_0001>
module attributes {stable_mosaic.version = 11 : i64} {
  func.func @_layernorm_kernel(%arg0: i32, %arg1: memref<16x128xf32, #tpu.memory_space<vmem>>, %arg2: memref<1x128xf32, #tpu.memory_space<vmem>>, %arg3: memref<1x128xf32, #tpu.memory_space<vmem>>, %arg4: memref<16x128xf32, #tpu.memory_space<vmem>>) attributes {dimension_semantics = [#tpu.dimension_semantics<parallel>], iteration_bounds = array<i64: 1>, scalar_prefetch = 0 : i64, scratch_operands = 0 : i64, tpu.core_type = #tpu.core_type<tc>, window_params = [{transform_indices = @transform_0, window_bounds = array<i64: 16, 128>}, {pipeline_mode = #tpu.pipeline_mode<synchronous>, transform_indices = @transform_1, window_bounds = array<i64: 1, 128>}, {pipeline_mode = #tpu.pipeline_mode<synchronous>, transform_indices = @transform_2, window_bounds = array<i64: 1, 128>}, {transform_indices = @transform_3, window_bounds = array<i64: 16, 128>}]} {
    %c0 = arith.constant 0 : index
    %c0_0 = arith.constant 0 : index
    %0 = vector.load %arg1[%c0, %c0_0] : memref<16x128xf32, #tpu.memory_space<vmem>>, vector<16x128xf32>
    %cst = arith.constant dense<0.000000e+00> : vector<16xf32>
    %1 = vector.multi_reduction <add>, %0, %cst [1] : vector<16x128xf32> to vector<16xf32>
    %2 = vector.shape_cast %1 : vector<16xf32> to vector<16x1xf32>
    %cst_1 = arith.constant 1.280000e+02 : f32
    %3 = vector.broadcast %cst_1 : f32 to vector<16x1xf32>
    %4 = arith.divf %2, %3 : vector<16x1xf32>
    %5 = vector.broadcast %4 : vector<16x1xf32> to vector<16x128xf32>
    %6 = arith.subf %0, %5 : vector<16x128xf32>
    %7 = arith.mulf %6, %6 : vector<16x128xf32>
    %cst_2 = arith.constant dense<0.000000e+00> : vector<16xf32>
    %8 = vector.multi_reduction <add>, %7, %cst_2 [1] : vector<16x128xf32> to vector<16xf32>
    %9 = vector.shape_cast %8 : vector<16xf32> to vector<16x1xf32>
    %cst_3 = arith.constant 1.270000e+02 : f32
    %10 = vector.broadcast %cst_3 : f32 to vector<16x1xf32>
    %11 = arith.divf %9, %10 : vector<16x1xf32>
    %12 = math.sqrt %11 : vector<16x1xf32>
    %cst_4 = arith.constant 1.000000e-07 : f32
    %13 = vector.broadcast %cst_4 : f32 to vector<16x1xf32>
    %14 = arith.addf %12, %13 : vector<16x1xf32>
    %cst_5 = arith.constant 1.000000e+00 : f32
    %15 = vector.broadcast %cst_5 : f32 to vector<16x1xf32>
    %16 = arith.divf %15, %14 : vector<16x1xf32>
    %c0_6 = arith.constant 0 : index
    %c0_7 = arith.constant 0 : index
    %17 = vector.load %arg2[%c0_6, %c0_7] : memref<1x128xf32, #tpu.memory_space<vmem>>, vector<1x128xf32>
    %18 = vector.broadcast %17 : vector<1x128xf32> to vector<16x128xf32>
    %19 = vector.broadcast %16 : vector<16x1xf32> to vector<16x128xf32>
    %20 = arith.mulf %18, %19 : vector<16x128xf32>
    %21 = arith.mulf %6, %20 : vector<16x128xf32>
    %c0_8 = arith.constant 0 : index
    %c0_9 = arith.constant 0 : index
    %22 = vector.load %arg3[%c0_8, %c0_9] : memref<1x128xf32, #tpu.memory_space<vmem>>, vector<1x128xf32>
    %23 = vector.broadcast %22 : vector<1x128xf32> to vector<16x128xf32>
    %24 = arith.addf %21, %23 : vector<16x128xf32>
    %c0_10 = arith.constant 0 : index
    %c0_11 = arith.constant 0 : index
    %25 = vector.load %arg4[%c0_10, %c0_11] : memref<16x128xf32, #tpu.memory_space<vmem>>, vector<16x128xf32>
    tpu.vector_store %arg4[%c0_10, %c0_11], %24 {strides = array<i32>} : memref<16x128xf32, #tpu.memory_space<vmem>>, vector<16x128xf32>,
    return
  }
  func.func @transform_0(%arg0: i32) -> (i32, i32) {
    %c0_i32 = arith.constant 0 : i32
    %c0_i32_0 = arith.constant 0 : i32
    return %arg0, %c0_i32 : i32, i32
  }
  func.func @transform_1(%arg0: i32) -> (i32, i32) {
    %c0_i32 = arith.constant 0 : i32
    %c0_i32_0 = arith.constant 0 : i32
    %c0_i32_1 = arith.constant 0 : i32
    return %c0_i32, %c0_i32_0 : i32, i32
  }
  func.func @transform_2(%arg0: i32) -> (i32, i32) {
    %c0_i32 = arith.constant 0 : i32
    %c0_i32_0 = arith.constant 0 : i32
    %c0_i32_1 = arith.constant 0 : i32
    return %c0_i32, %c0_i32_0 : i32, i32
  }
  func.func @transform_3(%arg0: i32) -> (i32, i32) {
    %c0_i32 = arith.constant 0 : i32
    %c0_i32_0 = arith.constant 0 : i32
    return %arg0, %c0_i32 : i32, i32
  }
}

</mosaic_0001>

<bundles_post_ra>
// kernel: tpu_custom_call.1
= control target key start
LH: loop header
LB: loop body
LE: loop exit
PB: predicated region body
PF: predicated region fallthrough
CT: control target
= control target key end

     0   :  { %8 = vsyncpa [#allocation3], 0  ;;  %s208_s0 = inlined_call_operand.hbm [shape: f32[16,128], index: 0, kind: input, shape index: {}]   ;;  %s209_s1 = inlined_call_operand.vmem [shape: f32[1,128], index: 1, kind: input, shape index: {}]   ;;  %s210_s2 = inlined_call_operand.vmem [shape: f32[1,128], index: 2, kind: input, shape index: {}]   ;;  %s211_s3 = inlined_call_operand.hbm [shape: f32[16,128], index: 3, kind: output, shape index: {}]  }
   0x1   :  { %9 = vsyncpa [#allocation4], 0  ;;  %s166_s12 = smov [#allocation2]  }
   0x2   :  { %s15_s13 = sshll.u32 %s166_s12, 4  ;;  %s16_s13 = int_to_ptr.vmem [resolvable:$true] %s15_s13 }
   0x3   :  { %s130_s14 = scalar_lea.vmem %s16_s13, 256  ;;  %p135_p1 = scmp.lt.s32.totalorder %s16_s13, %s16_s13 }
   0x4   :  { %p131_p0 = scmp.ne.s32.totalorder %s16_s13, %s130_s14  ;;  %p136_p2 = scmp.lt.s32.totalorder %s130_s14, %s130_s14 }
   0x6   :  { %p137_p3 = por %p136_p2, %p135_p1 }
   0x8   :  { %p138_p4 = pnand %p137_p3, %p131_p0 }
   0xa   :  { %141 = shalt.err (!%p138_p4)
}
   0xb   :  { %s167_s15 = smov 128   ;;  %s168_s16 = smov 8  }
   0xc   :  { %21 = dma.hbm_to_vmem [thread:$0]  %s208_s0, 256, %s16_s13, [#allocation3], %s167_s15, %s167_s15, %s168_s16  }
   0xd   :  { %162 = dma.done.wait [#allocation3], 256  }
   0xe   :  { %163 = vsyncadd [#allocation3], 4294967040  ;;  %v29_v0 = vld [vmem:[#allocation2] sm:$0xff]  ;;  %v30_v1 = vld [vmem:[#allocation2 + $0x8] sm:$0xff]  ;;  %s169_s22 = smov [#allocation5]  }
   0xf   :  { %31 = vadd.xlane.f32.xlu0 %v29_v0  ;;  %v108_v26 = vld [vmem:[%s209_s1] ss:$0 sm:$0xff]  ;;  %s96_s23 = sshll.u32 %s169_s22, 4  ;;  %s97_s23 = int_to_ptr.vmem [resolvable:$true] %s96_s23 }
  0x10   :  { %v109_v29 = vld [vmem:[%s210_s2] ss:$0 sm:$0xff]  ;;  %s142_s24 = scalar_lea.vmem %s97_s23, 256  ;;  %p147_p6 = scmp.lt.s32.totalorder %s97_s23, %s97_s23 }
  0x11   :  { %p143_p5 = scmp.ne.s32.totalorder %s97_s23, %s142_s24  ;;  %p148_p7 = scmp.lt.s32.totalorder %s142_s24, %s142_s24 }
  0x13   :  { %33 = vadd.xlane.f32.xlu0 %v30_v1  ;;  %p149_p8 = por %p148_p7, %p147_p6 }
  0x15   :  { %p150_p9 = pnand %p149_p8, %p143_p5 }
  0x98   :  { %v32_v2 = vpop.xlane.xlu0 %31 }
  0x99   :  { %v36_v3 = vmul.f32 0.0078125, %v32_v2 }
  0x9b   :  { %v38_v4 = vsub.f32 %v29_v0, %v36_v3 }
  0x9c   :  { %v34_v5 = vpop.xlane.xlu0 %33 }
  0x9d   :  { %v37_v6 = vmul.f32 0.0078125, %v34_v5  ;;  %v40_v7 = vmul.f32 %v38_v4, %v38_v4 }
  0x9f   :  { %v39_v8 = vsub.f32 %v30_v1, %v37_v6  ;;  %42 = vadd.xlane.f32.xlu1 %v40_v7 }
  0xa1   :  { %v41_v9 = vmul.f32 %v39_v8, %v39_v8 }
  0xa3   :  { %44 = vadd.xlane.f32.xlu1 %v41_v9 }
 0x128   :  { %v43_v10 = vpop.xlane.xlu1 %42 }
 0x129   :  { %v47_v11 = vmul.f32 0.007874016, %v43_v10 }
 0x12b   :  { %114 = vrsqrt.f32 %v47_v11  ;;  %vm51_vm0 = vcmp.eq.f32.partialorder %v47_v11, inf  ;;  %v54_v16 = vand.u32 2147483648, %v47_v11  ;;  %vm53_vm1 = vcmp.eq.f32.partialorder %v47_v11, 0.0 }
 0x12c   :  { %v45_v12 = vpop.xlane.xlu1 %44 }
 0x12d   :  { %v48_v13 = vmul.f32 0.007874016, %v45_v12 }
 0x12f   :  { %116 = vrsqrt.f32 %v48_v13  ;;  %vm58_vm2 = vcmp.eq.f32.partialorder %v48_v13, inf  ;;  %v61_v22 = vand.u32 2147483648, %v48_v13  ;;  %vm60_vm3 = vcmp.eq.f32.partialorder %v48_v13, 0.0 }
 0x138   :  { %v115_v14 = vpop.eup %114 }
 0x139   :  { %v50_v15 = vmul.f32 %v115_v14, %v47_v11 }
 0x13b   :  { %v52_v17 = vsel %vm51_vm0, %v47_v11, %v50_v15 }
 0x13c   :  { %v117_v18 = vpop.eup %116  ;;  %v55_v19 = vsel %vm53_vm1, %v54_v16, %v52_v17 }
 0x13d   :  { %v63_v20 = vadd.f32 1e-07, %v55_v19  ;;  %v57_v21 = vmul.f32 %v117_v18, %v48_v13 }
 0x13f   :  { %118 = vrcp.f32 %v63_v20  ;;  %v59_v23 = vsel %vm58_vm2, %v48_v13, %v57_v21 }
 0x140   :  { %v62_v24 = vsel %vm60_vm3, %v61_v22, %v59_v23 }
 0x141   :  { %v64_v25 = vadd.f32 1e-07, %v62_v24 }
 0x143   :  { %120 = vrcp.f32 %v64_v25 }
 0x14c   :  { %v119_v27 = vpop.eup %118 }
 0x14d   :  { %v76_v28 = vmul.f32 %v119_v27, %v108_v26 }
 0x14f   :  { %v78_v30 = vmul.f32 %v76_v28, %v38_v4 }
 0x150   :  { %v121_v31 = vpop.eup %120 }
 0x151   :  { %v77_v32 = vmul.f32 %v121_v31, %v108_v26  ;;  %v87_v33 = vadd.f32 %v109_v29, %v78_v30 }
 0x153   :  { %v79_v34 = vmul.f32 %v77_v32, %v39_v8  ;;  %89 = vst [vmem:[#allocation5] sm:$0xff] %v87_v33 }
 0x155   :  { %v88_v35 = vadd.f32 %v109_v29, %v79_v34 }
 0x157   :  { %90 = vst [vmem:[#allocation5 + $0x8] sm:$0xff] %v88_v35 }
 0x158   :  { %153 = shalt.err (!%p150_p9)
}
 0x159   :  { %102 = dma.vmem_to_hbm [thread:$0]  %s97_s23, 256, %s211_s3, [#allocation4], %s167_s15, %s167_s15, %s168_s16  }
 0x15a   :  { %164 = dma.done.wait [#allocation4], 256  }
 0x15b   :  { %165 = vsyncadd [#allocation4], 4294967040 }
 0x15c   :  { %106 = vsyncpa [#allocation3], 1 }
 0x15d   :  { %107 = vsyncpa [#allocation4], 1 }

</bundles_post_ra>
